<compile_context>
chip_gen: v5e
topology: v5e:2x2
jax: 0.10.0
libtpu: 0.0.40
codegen_flags: <defaults>
</compile_context>

<pallas_src>
import functools

import jax
import jax.numpy as jnp
from jax.experimental import pallas as pl
from jax.experimental.pallas import tpu as pltpu

IN_FEATURES = 64
OUT_FEATURES = 128
SCALING_FACTOR = 0.5

MAX_TILE_M = 2048   # row-tile cap for the large-M streaming path
BF16_MIN_M = 4096   # switch inputs to bf16 once the problem is clearly HBM-bound


def fused_linear_kernel(x_ref, w_ref, b_ref, o_ref, *, factor):
    # x_ref: (tile_m, K), w_ref: (K, N) [MXU-native orientation],
    # b_ref: (1, N) f32, o_ref: (tile_m, N)
    acc = jnp.dot(x_ref[...], w_ref[...], preferred_element_type=jnp.float32)
    o_ref[...] = ((acc + b_ref[...]) * factor).astype(o_ref.dtype)


def prepare_params(w, b):
    """One-time layout prep (do at parameter-init time, NOT per call).

    w: (N, K) nn.Linear weight -> (K, N) so the kernel feeds the MXU directly;
    b: (N,) -> (1, N) lane-dense bias row.
    """
    return jnp.asarray(w).T, jnp.asarray(b).reshape(1, -1)


@functools.partial(jax.jit, static_argnames=("scaling_factor",))
def fused_linear(x, w_kn, b2d, *, scaling_factor=SCALING_FACTOR):
    """x: [M, K], w_kn: [K, N] (pre-transposed), b2d: [1, N] -> [M, N]."""
    M, K = x.shape
    Kw, N = w_kn.shape
    assert K == Kw and b2d.shape == (1, N)

    factor = float(1.0 + scaling_factor)
    out_dtype = x.dtype

    # Large-M regime is HBM-bound: stream x / weight as bf16, accumulate in f32.
    if M >= BF16_MIN_M:
        x_in = x.astype(jnp.bfloat16)
        w_in = w_kn.astype(jnp.bfloat16)
    else:
        x_in, w_in = x, w_kn

    # Tile only the M (row) axis; weight & bias stay resident across the grid.
    tile_m = M if M <= MAX_TILE_M else MAX_TILE_M
    num_tiles = pl.cdiv(M, tile_m)
    m_pad = num_tiles * tile_m
    if m_pad != M:
        x_in = jnp.pad(x_in, ((0, m_pad - M), (0, 0)))

    kernel = functools.partial(fused_linear_kernel, factor=factor)

    in_bytes = jnp.dtype(x_in.dtype).itemsize
    out_bytes = jnp.dtype(out_dtype).itemsize
    cost = pl.CostEstimate(
        flops=2 * M * K * N,
        bytes_accessed=in_bytes * (M * K + K * N) + 4 * N + out_bytes * M * N,
        transcendentals=0,
    )

    out = pl.pallas_call(
        kernel,
        out_shape=jax.ShapeDtypeStruct((m_pad, N), out_dtype),
        grid_spec=pl.GridSpec(
            grid=(num_tiles,),
            in_specs=[
                pl.BlockSpec((tile_m, K), lambda i: (i, 0)),  # x row tile (streamed)
                pl.BlockSpec((K, N), lambda i: (0, 0)),       # weight, resident across M
                pl.BlockSpec((1, N), lambda i: (0, 0)),       # bias, resident across M
            ],
            out_specs=pl.BlockSpec((tile_m, N), lambda i: (i, 0)),
        ),
        compiler_params=pltpu.CompilerParams(
            dimension_semantics=("parallel",),  # shards row tiles across v7x's 2 TCs
        ),
        cost_estimate=cost,
    )(x_in, w_in, b2d)

    return out if m_pad == M else out[:M]


if __name__ == "__main__":
    key = jax.random.PRNGKey(0)
    kx, kw, kb = jax.random.split(key, 3)

    M = 64  # batch of rows
    K = IN_FEATURES
    N = OUT_FEATURES

    # Deterministic nn.Linear-style init: U(-1/sqrt(K), 1/sqrt(K))
    bound = 1.0 / (K ** 0.5)
    x = jax.random.normal(kx, (M, K), dtype=jnp.float32)
    w = jax.random.uniform(kw, (N, K), dtype=jnp.float32, minval=-bound, maxval=bound)
    b = jax.random.uniform(kb, (N,), dtype=jnp.float32, minval=-bound, maxval=bound)

    # One-time parameter layout prep (analogue of module init).
    w_kn, b2d = prepare_params(w, b)

    out = fused_linear(x, w_kn, b2d, scaling_factor=SCALING_FACTOR)
    out = jax.block_until_ready(out)

    # Reference check (pure JAX)
    ref = (x @ w.T + b) * (1.0 + SCALING_FACTOR)
    assert out.shape == (M, N)
    assert jnp.allclose(out, ref, atol=1e-4, rtol=1e-4), "mismatch vs reference"

    print("KERNEL_OK")
</pallas_src>

<mosaic_0001>
module attributes {stable_mosaic.version = 11 : i64} {
  func.func @fused_linear_kernel(%arg0: i32, %arg1: memref<64x64xf32, #tpu.memory_space<vmem>>, %arg2: memref<64x128xf32, #tpu.memory_space<vmem>>, %arg3: memref<1x128xf32, #tpu.memory_space<vmem>>, %arg4: memref<64x128xf32, #tpu.memory_space<vmem>>) attributes {dimension_semantics = [#tpu.dimension_semantics<parallel>], iteration_bounds = array<i64: 1>, scalar_prefetch = 0 : i64, scratch_operands = 0 : i64, tpu.core_type = #tpu.core_type<tc>, window_params = [{transform_indices = @transform_0, window_bounds = array<i64: 64, 64>}, {pipeline_mode = #tpu.pipeline_mode<synchronous>, transform_indices = @transform_1, window_bounds = array<i64: 64, 128>}, {pipeline_mode = #tpu.pipeline_mode<synchronous>, transform_indices = @transform_2, window_bounds = array<i64: 1, 128>}, {transform_indices = @transform_3, window_bounds = array<i64: 64, 128>}]} {
    %c0 = arith.constant 0 : index
    %c0_0 = arith.constant 0 : index
    %0 = vector.load %arg1[%c0, %c0_0] : memref<64x64xf32, #tpu.memory_space<vmem>>, vector<64x64xf32>
    %c0_1 = arith.constant 0 : index
    %c0_2 = arith.constant 0 : index
    %1 = vector.load %arg2[%c0_1, %c0_2] : memref<64x128xf32, #tpu.memory_space<vmem>>, vector<64x128xf32>
    %cst = arith.constant dense<0.000000e+00> : vector<64x128xf32>
    %2 = tpu.matmul %0, %1, %cst {dimension_numbers = #tpu.dot_dimension_numbers<[1], [0], [0], [1], [0, 0, 1, 1], [], []>} : vector<64x64xf32>, vector<64x128xf32>, vector<64x128xf32> -> vector<64x128xf32>
    %c0_3 = arith.constant 0 : index
    %c0_4 = arith.constant 0 : index
    %3 = vector.load %arg3[%c0_3, %c0_4] : memref<1x128xf32, #tpu.memory_space<vmem>>, vector<1x128xf32>
    %4 = vector.broadcast %3 : vector<1x128xf32> to vector<64x128xf32>
    %5 = arith.addf %2, %4 : vector<64x128xf32>
    %cst_5 = arith.constant 1.500000e+00 : f32
    %6 = vector.broadcast %cst_5 : f32 to vector<64x128xf32>
    %7 = arith.mulf %5, %6 : vector<64x128xf32>
    %c0_6 = arith.constant 0 : index
    %c0_7 = arith.constant 0 : index
    %8 = vector.load %arg4[%c0_6, %c0_7] : memref<64x128xf32, #tpu.memory_space<vmem>>, vector<64x128xf32>
    tpu.vector_store %arg4[%c0_6, %c0_7], %7 {strides = array<i32>} : memref<64x128xf32, #tpu.memory_space<vmem>>, vector<64x128xf32>,
    return
  }
  func.func @transform_0(%arg0: i32) -> (i32, i32) {
    %c0_i32 = arith.constant 0 : i32
    %c0_i32_0 = arith.constant 0 : i32
    return %arg0, %c0_i32 : i32, i32
  }
  func.func @transform_1(%arg0: i32) -> (i32, i32) {
    %c0_i32 = arith.constant 0 : i32
    %c0_i32_0 = arith.constant 0 : i32
    %c0_i32_1 = arith.constant 0 : i32
    return %c0_i32, %c0_i32_0 : i32, i32
  }
  func.func @transform_2(%arg0: i32) -> (i32, i32) {
    %c0_i32 = arith.constant 0 : i32
    %c0_i32_0 = arith.constant 0 : i32
    %c0_i32_1 = arith.constant 0 : i32
    return %c0_i32, %c0_i32_0 : i32, i32
  }
  func.func @transform_3(%arg0: i32) -> (i32, i32) {
    %c0_i32 = arith.constant 0 : i32
    %c0_i32_0 = arith.constant 0 : i32
    return %arg0, %c0_i32 : i32, i32
  }
}

</mosaic_0001>

<bundles_post_ra>
// kernel: fused_linear.1
= control target key start
LH: loop header
LB: loop body
LE: loop exit
PB: predicated region body
PF: predicated region fallthrough
CT: control target
= control target key end

     0   :  { %8 = vsyncpa [#allocation3], 0  ;;  %s339_s0 = inlined_call_operand.hbm [shape: f32[64,64], index: 0, kind: input, shape index: {}]   ;;  %s340_s1 = inlined_call_operand.hbm [shape: f32[64,128], index: 1, kind: input, shape index: {}]   ;;  %s341_s2 = inlined_call_operand.vmem [shape: f32[1,128], index: 2, kind: input, shape index: {}]   ;;  %s342_s3 = inlined_call_operand.hbm [shape: f32[64,128], index: 3, kind: output, shape index: {}]  }
   0x1   :  { %9 = vsyncpa [#allocation6], 0 }
   0x2   :  { %10 = vsyncpa [#allocation4], 0  ;;  %s15_s14 = sshll.u32 %s339_s0, 4  ;;  %s285_s15 = smov [#allocation2]   ;;  %s16_s14 = int_to_ptr.hbm [resolvable:$true] %s15_s14 }
   0x3   :  { %s17_s16 = sshll.u32 %s285_s15, 4  ;;  %s28_s19 = sshll.u32 %s340_s1, 4  ;;  %s18_s16 = int_to_ptr.vmem [resolvable:$true] %s17_s16  ;;  %s29_s19 = int_to_ptr.hbm [resolvable:$true] %s28_s19 }
   0x4   :  { %s286_s20 = smov 128   ;;  %s287_s21 = smov 8  }
   0x5   :  { %23 = dma.hbm_to_vmem [thread:$0]  %s16_s14, 1024, %s18_s16, [#allocation3], %s286_s20, %s286_s20, %s287_s21  }
   0x6   :  { %s288_s22 = smov [#allocation5]  }
   0x7   :  { %s30_s23 = sshll.u32 %s288_s22, 4  ;;  %s31_s23 = int_to_ptr.vmem [resolvable:$true] %s30_s23 }
   0x8   :  { %36 = dma.hbm_to_vmem [thread:$0]  %s29_s19, 1024, %s31_s23, [#allocation6], %s286_s20, %s286_s20, %s287_s21  }
   0x9   :  { %279 = dma.done.wait [#allocation3], 1024  }
   0xa   :  { %280 = vsyncadd [#allocation3], 4294966272 }
   0xb   :  { %281 = dma.done.wait [#allocation6], 1024  }
   0xc   :  { %282 = vsyncadd [#allocation6], 4294966272  ;;  %v62_v0 = vld [vmem:[#allocation5 + $0x38] sm:$0xff]  ;;  %v61_v1 = vld [vmem:[#allocation5 + $0x30] sm:$0xff]  ;;  %vm67_vm0 = vcmask 523264   ;;  %s155_s27 = sshll.u32 %s342_s3, 4  ;;  %s156_s27 = int_to_ptr.hbm [resolvable:$true] %s155_s27 }
   0xd   :  { %178 = vmatpush.msra.mxu2 %v62_v0  ;;  %179 = vmatpush.msra.mxu3 %v62_v0  ;;  %v60_v2 = vld [vmem:[#allocation5 + $0x28] sm:$0xff]  ;;  %v59_v3 = vld [vmem:[#allocation5 + $0x20] sm:$0xff]  ;;  %v58_v4 = vld [vmem:[#allocation5 + $0x18] sm:$0xff] }
   0xe   :  { %100 = vmatpush.msra.mxu0 %v62_v0  ;;  %177 = vmatpush.msra.mxu1 %v62_v0  ;;  %v57_v5 = vld [vmem:[#allocation5 + $0x10] sm:$0xff]  ;;  %v56_v6 = vld [vmem:[#allocation5 + $0x8] sm:$0xff]  ;;  %v55_v7 = vld [vmem:[#allocation5] sm:$0xff] }
   0xf   :  { %181 = vmatpush.msra.mxu2 %v61_v1  ;;  %182 = vmatpush.msra.mxu3 %v61_v1  ;;  %v51_v8 = vld [vmem:[#allocation2 + $0x20] sm:$0xff]  ;;  %v53_v9 = vld [vmem:[#allocation2 + $0x30] sm:$0xff]  ;;  %v52_v12 = vld [vmem:[#allocation2 + $0x28] sm:$0xff] }
  0x10   :  { %101 = vmatpush.msra.mxu0 %v61_v1  ;;  %180 = vmatpush.msra.mxu1 %v61_v1  ;;  %v47_v10 = vld [vmem:[#allocation2] sm:$0xff]  ;;  %v49_v11 = vld [vmem:[#allocation2 + $0x10] sm:$0xff]  ;;  %v54_v13 = vld [vmem:[#allocation2 + $0x38] sm:$0xff] }
  0x11   :  { %184 = vmatpush.msra.mxu2 %v60_v2  ;;  %185 = vmatpush.msra.mxu3 %v60_v2  ;;  %v48_v14 = vld [vmem:[#allocation2 + $0x8] sm:$0xff]  ;;  %v50_v15 = vld [vmem:[#allocation2 + $0x18] sm:$0xff]  ;;  %v206_v16 = vld [vmem:[%s341_s2] ss:$0 sm:$0xff]  ;;  %s289_s2 = smov [#allocation7]  }
  0x12   :  { %102 = vmatpush.msra.mxu0 %v60_v2  ;;  %183 = vmatpush.msra.mxu1 %v60_v2  ;;  %s153_s24 = sshll.u32 %s289_s2, 4  ;;  %s154_s24 = int_to_ptr.vmem [resolvable:$true] %s153_s24 }
  0x13   :  { %187 = vmatpush.msra.mxu2 %v59_v3  ;;  %188 = vmatpush.msra.mxu3 %v59_v3 }
  0x14   :  { %103 = vmatpush.msra.mxu0 %v59_v3  ;;  %186 = vmatpush.msra.mxu1 %v59_v3 }
  0x15   :  { %190 = vmatpush.msra.mxu2 %v58_v4  ;;  %191 = vmatpush.msra.mxu3 %v58_v4 }
  0x16   :  { %104 = vmatpush.msra.mxu0 %v58_v4  ;;  %189 = vmatpush.msra.mxu1 %v58_v4 }
  0x17   :  { %193 = vmatpush.msra.mxu2 %v57_v5  ;;  %194 = vmatpush.msra.mxu3 %v57_v5 }
  0x18   :  { %105 = vmatpush.msra.mxu0 %v57_v5  ;;  %192 = vmatpush.msra.mxu1 %v57_v5 }
  0x19   :  { %196 = vmatpush.msra.mxu2 %v56_v6  ;;  %197 = vmatpush.msra.mxu3 %v56_v6 }
  0x1a   :  { %106 = vmatpush.msra.mxu0 %v56_v6  ;;  %195 = vmatpush.msra.mxu1 %v56_v6 }
  0x1b   :  { %199 = vmatpush.msra.mxu2 %v55_v7  ;;  %200 = vmatpush.msra.mxu3 %v55_v7 }
  0x1c   :  { %173 = vmatmul.msk.f32.vlgmr.msra.gmra.mxu2 %vm67_vm0, %v51_v8  ;;  %175 = vmatmul.msk.f32.vlgmr.msra.gmra.mxu3 %vm67_vm0, %v53_v9 }
  0x1d   :  { %107 = vmatpush.msra.mxu0 %v55_v7  ;;  %198 = vmatpush.msra.mxu1 %v55_v7 }
  0x1e   :  { %169 = vmatmul.msk.f32.vlgmr.msra.gmra.mxu0 %vm67_vm0, %v47_v10  ;;  %171 = vmatmul.msk.f32.vlgmr.msra.gmra.mxu1 %vm67_vm0, %v49_v11 }
  0x24   :  { %174 = vmatmul.msk.f32.gmra.mxu2 %vm67_vm0, %v52_v12  ;;  %176 = vmatmul.msk.f32.gmra.mxu3 %vm67_vm0, %v54_v13 }
  0x26   :  { %170 = vmatmul.msk.f32.gmra.mxu0 %vm67_vm0, %v48_v14  ;;  %172 = vmatmul.msk.f32.gmra.mxu1 %vm67_vm0, %v50_v15 }
  0x9b   :  { %v109_v17 = vpop.f32.mrf.mxu0  ;;  %v115_v18 = vpop.f32.mrf.mxu1 }
  0x9c   :  { %v110_v19 = vadd.f32 %v206_v16, %v109_v17  ;;  %v116_v20 = vadd.f32 %v206_v16, %v115_v18 }
  0x9e   :  { %v133_v21 = vmul.f32 1.5, %v110_v19  ;;  %v135_v22 = vmul.f32 1.5, %v116_v20 }
  0x9f   :  { %v121_v23 = vpop.f32.mrf.mxu2  ;;  %v127_v24 = vpop.f32.mrf.mxu3 }
  0xa0   :  { %141 = vst [vmem:[#allocation7] sm:$0xff] %v133_v21  ;;  %v122_v25 = vadd.f32 %v206_v16, %v121_v23  ;;  %v128_v26 = vadd.f32 %v206_v16, %v127_v24 }
  0xa1   :  { %143 = vst [vmem:[#allocation7 + $0x10] sm:$0xff] %v135_v22 }
  0xa2   :  { %v137_v27 = vmul.f32 1.5, %v122_v25  ;;  %v139_v28 = vmul.f32 1.5, %v128_v26 }
  0xa3   :  { %v112_v29 = vpop.f32.mrf.mxu0  ;;  %v118_v30 = vpop.f32.mrf.mxu1 }
  0xa4   :  { %145 = vst [vmem:[#allocation7 + $0x20] sm:$0xff] %v137_v27  ;;  %v113_v31 = vadd.f32 %v206_v16, %v112_v29  ;;  %v119_v32 = vadd.f32 %v206_v16, %v118_v30 }
  0xa5   :  { %147 = vst [vmem:[#allocation7 + $0x30] sm:$0xff] %v139_v28 }
  0xa6   :  { %v134_v33 = vmul.f32 1.5, %v113_v31  ;;  %v136_v34 = vmul.f32 1.5, %v119_v32 }
  0xa7   :  { %v124_v35 = vpop.f32.mrf.mxu2  ;;  %v130_v36 = vpop.f32.mrf.mxu3 }
  0xa8   :  { %142 = vst [vmem:[#allocation7 + $0x8] sm:$0xff] %v134_v33  ;;  %v125_v37 = vadd.f32 %v206_v16, %v124_v35  ;;  %v131_v38 = vadd.f32 %v206_v16, %v130_v36 }
  0xa9   :  { %144 = vst [vmem:[#allocation7 + $0x18] sm:$0xff] %v136_v34 }
  0xaa   :  { %v138_v39 = vmul.f32 1.5, %v125_v37  ;;  %v140_v40 = vmul.f32 1.5, %v131_v38 }
  0xac   :  { %146 = vst [vmem:[#allocation7 + $0x28] sm:$0xff] %v138_v39 }
  0xad   :  { %148 = vst [vmem:[#allocation7 + $0x38] sm:$0xff] %v140_v40 }
  0xae   :  { %161 = dma.vmem_to_hbm [thread:$0]  %s154_s24, 1024, %s156_s27, [#allocation4], %s286_s20, %s286_s20, %s287_s21  }
  0xaf   :  { %283 = dma.done.wait [#allocation4], 1024  }
  0xb0   :  { %284 = vsyncadd [#allocation4], 4294966272 }
  0xb1   :  { %166 = vsyncpa [#allocation3], 1 }
  0xb2   :  { %167 = vsyncpa [#allocation6], 1 }
  0xb3   :  { %168 = vsyncpa [#allocation4], 1 }

</bundles_post_ra>
